<compile_context>
chip_gen: v5e
topology: v5e:2x2
jax: 0.10.0
libtpu: 0.0.40
codegen_flags: <defaults>
</compile_context>

<pallas_src>
import math

import jax
import jax.numpy as jnp
from jax.experimental import pallas as pl
from jax.experimental.pallas import tpu as pltpu


_TARGET_BLOCK_BYTES = 6 * 1024 * 1024   # ~6 MiB per block (all generations)
_VMEM_LIMIT_BYTES = 48 * 1024 * 1024    # explicit scoped-VMEM limit, safe on v7x


def _identity_kernel(x_ref, o_ref):
    # Pure elementwise copy of the current VMEM tile.
    o_ref[...] = x_ref[...]


def _pact_identity_impl(x):
    """Identity forward pass implemented as a Pallas TPU kernel."""
    orig_shape = x.shape
    dtype = x.dtype

    # Degenerate cases: scalars / empty tensors need no kernel.
    total = math.prod(orig_shape) if orig_shape else 1
    if x.ndim == 0 or total == 0:
        return x

    # ---- lane-dense 2D view --------------------------------------------------
    lane = next((c for c in (1024, 512, 256, 128) if total % c == 0), None)
    if lane is None:
        # Ragged size: padding + slicing back would roughly triple HBM traffic
        # for a semantically free op, so just return the input (exact identity).
        return x

    rows = total // lane
    x2d = x.reshape(rows, lane)  # bitcast under jit

    # ---- tile size: ~6 MiB blocks, dtype-aware sublane multiple --------------
    itemsize = jnp.dtype(dtype).itemsize
    sublane = max(8, 32 // max(itemsize, 1))  # 8 (f32) / 16 (bf16) / 32 (i8)

    tile_rows = max(1, _TARGET_BLOCK_BYTES // (lane * itemsize))
    if tile_rows >= rows:
        tile_rows = rows  # full-extent block: always a legal block dim
    else:
        tile_rows = max(sublane, (tile_rows // sublane) * sublane)

    # Guarantee >= 2 grid steps (when big enough) so both v7x TensorCores
    # get a share of the HBM stream under dimension_semantics=("parallel",).
    if pl.cdiv(rows, tile_rows) < 2 and rows > 2 * sublane:
        tile_rows = (((rows + 1) // 2 + sublane - 1) // sublane) * sublane

    grid = (pl.cdiv(rows, tile_rows),)
    nbytes = total * itemsize

    out2d = pl.pallas_call(
        _identity_kernel,
        out_shape=jax.ShapeDtypeStruct((rows, lane), dtype),
        grid_spec=pltpu.PrefetchScalarGridSpec(
            num_scalar_prefetch=0,
            grid=grid,
            in_specs=[pl.BlockSpec((tile_rows, lane), lambda i: (i, 0))],
            out_specs=pl.BlockSpec((tile_rows, lane), lambda i: (i, 0)),
        ),
        compiler_params=pltpu.CompilerParams(
            dimension_semantics=("parallel",),
            vmem_limit_bytes=_VMEM_LIMIT_BYTES,
        ),
        # Output reuses the input slab when the input buffer is dead
        # (XLA inserts a defensive copy only if the input is still live).
        input_output_aliases={0: 0},
        cost_estimate=pl.CostEstimate(
            flops=0, transcendentals=0, bytes_accessed=2 * nbytes
        ),
    )(x2d)

    return out2d.reshape(orig_shape)


# jit so the reshapes are bitcasts, the wrapper is a single dispatch, and the
# alias/no-op paths are real (per perf review).
pact_identity = jax.jit(_pact_identity_impl)


if __name__ == "__main__":
    key = jax.random.PRNGKey(0)
    # NCHW activations, small shape: batch=2, channels=4, spatial=16x16
    x = jax.random.normal(key, (2, 4, 16, 16), dtype=jnp.float32)

    y = pact_identity(x)
    y = jax.block_until_ready(y)

    assert y.shape == x.shape
    assert y.dtype == x.dtype
    assert bool(jnp.all(y == x))

    print("KERNEL_OK")
</pallas_src>

<mosaic_0001>
module attributes {stable_mosaic.version = 11 : i64} {
  func.func @_identity_kernel(%arg0: i32, %arg1: memref<2x1024xf32, #tpu.memory_space<vmem>>, %arg2: memref<2x1024xf32, #tpu.memory_space<vmem>>) attributes {dimension_semantics = [#tpu.dimension_semantics<parallel>], iteration_bounds = array<i64: 1>, scalar_prefetch = 0 : i64, scratch_operands = 0 : i64, tpu.core_type = #tpu.core_type<tc>, window_params = [{transform_indices = @transform_0, window_bounds = array<i64: 2, 1024>}, {transform_indices = @transform_1, window_bounds = array<i64: 2, 1024>}]} {
    %c0 = arith.constant 0 : index
    %c0_0 = arith.constant 0 : index
    %0 = vector.load %arg1[%c0, %c0_0] : memref<2x1024xf32, #tpu.memory_space<vmem>>, vector<2x1024xf32>
    %c0_1 = arith.constant 0 : index
    %c0_2 = arith.constant 0 : index
    %1 = vector.load %arg2[%c0_1, %c0_2] : memref<2x1024xf32, #tpu.memory_space<vmem>>, vector<2x1024xf32>
    tpu.vector_store %arg2[%c0_1, %c0_2], %0 {strides = array<i32>} : memref<2x1024xf32, #tpu.memory_space<vmem>>, vector<2x1024xf32>,
    return
  }
  func.func @transform_0(%arg0: i32) -> (i32, i32) {
    %c0_i32 = arith.constant 0 : i32
    %c0_i32_0 = arith.constant 0 : i32
    return %arg0, %c0_i32 : i32, i32
  }
  func.func @transform_1(%arg0: i32) -> (i32, i32) {
    %c0_i32 = arith.constant 0 : i32
    %c0_i32_0 = arith.constant 0 : i32
    return %arg0, %c0_i32 : i32, i32
  }
}

</mosaic_0001>

<bundles_post_ra>
// kernel: _pact_identity_impl.1
= control target key start
LH: loop header
LB: loop body
LE: loop exit
PB: predicated region body
PF: predicated region fallthrough
CT: control target
= control target key end

     0   :  { %s38_s0 = inlined_call_operand.vmem [shape: f32[2,1024], index: 0, kind: input, shape index: {}, may-alias: {0,1}]   ;;  %s39_s1 = inlined_call_operand.vmem [shape: f32[2,1024], index: 1, kind: output, shape index: {}, may-alias: {0,1}]  }
   0x1   :  { %v8_v0 = vld [vmem:[%s38_s0] sm:$0xff]  ;;  %v9_v1 = vld [vmem:[%s38_s0 + $0x8] sm:$0xff] }
   0x2   :  { %10 = vst [vmem:[%s39_s1] sm:$0xff] %v8_v0 }
   0x3   :  { %11 = vst [vmem:[%s39_s1 + $0x8] sm:$0xff] %v9_v1 }

</bundles_post_ra>
